<compile_context>
chip_gen: v7x
topology: tpu7x:2x2x1
jax: 0.10.0
libtpu: 0.0.40
codegen_flags: <defaults>
</compile_context>

<pallas_src>
import functools

import numpy as np
import jax
import jax.numpy as jnp
from jax import lax
from jax.experimental import pallas as pl
from jax.experimental.pallas import tpu as pltpu


def _roll_static(x, shift, axis):
    """np.roll / torch.roll semantics (out[i] = x[(i - shift) % n]) with a static shift."""
    n = x.shape[axis]
    shift = shift % n
    if shift == 0:
        return x
    lo = lax.slice_in_dim(x, n - shift, n, axis=axis)   # wraps to the front
    hi = lax.slice_in_dim(x, 0, n - shift, axis=axis)
    return lax.concatenate([lo, hi], dimension=axis)


def _cyclic_shift_kernel(x_ref, o_ref, *, shift_h, shift_lane):
    # x_ref: (B, H, W*C)  -- H on sublanes, fused W*C on lanes.
    x = x_ref[...]
    x = _roll_static(x, shift_h, axis=1)      # roll over H  (module dim 1)
    x = _roll_static(x, shift_lane, axis=2)   # roll over W  (module dim 2), folded onto the lane axis
    o_ref[...] = x                            # single lane-dense store


def cyclic_shift(x, displacement):
    """Equivalent of CyclicShift(displacement)(x): torch.roll(x, (d, d), dims=(1, 2))."""
    Bc, Hc, Wc, Cc = x.shape
    L = Wc * Cc
    # Metadata-only reshape: fuse (W, C) onto the lane axis so the W-shift is a
    # lane rotation by displacement*C and the output store is lane-dense.
    x2 = x.reshape(Bc, Hc, L)
    shift_h = displacement % Hc
    shift_lane = (displacement % Wc) * Cc
    out = pl.pallas_call(
        functools.partial(_cyclic_shift_kernel,
                          shift_h=shift_h, shift_lane=shift_lane),
        out_shape=jax.ShapeDtypeStruct((Bc, Hc, L), x.dtype),
        grid=(1,),  # whole array is one VMEM-resident block -> single grid step
        in_specs=[pl.BlockSpec((Bc, Hc, L), lambda i: (0, 0, 0))],
        out_specs=pl.BlockSpec((Bc, Hc, L), lambda i: (0, 0, 0)),
        compiler_params=pltpu.CompilerParams(dimension_semantics=("arbitrary",)),
    )(x2)
    return out.reshape(Bc, Hc, Wc, Cc)


if __name__ == "__main__":
    key = jax.random.PRNGKey(0)
    # Swin-style usage: (b, n_h, n_w, dim) feature map, displacement = ±(window_size // 2).
    B, H, W, C = 2, 8, 8, 16          # W*C = 128 -> exactly one lane tile (lane-dense stores)
    window_size = 4

    x = jax.random.normal(key, (B, H, W, C), jnp.float32)

    ok = True
    for disp in (-(window_size // 2), window_size // 2):   # forward shift and un-shift
        fn = jax.jit(functools.partial(cyclic_shift, displacement=disp))
        out = jax.block_until_ready(fn(x))
        ref = jnp.roll(x, shift=(disp, disp), axis=(1, 2))  # == torch.roll semantics
        np.testing.assert_array_equal(np.asarray(out), np.asarray(ref))

    if ok:
        print("KERNEL_OK")
</pallas_src>

<mosaic_0001>
module attributes {stable_mosaic.version = 11 : i64} {
  func.func @_cyclic_shift_kernel(%arg0: i32, %arg1: memref<2x8x128xf32, #tpu.memory_space<vmem>>, %arg2: memref<2x8x128xf32, #tpu.memory_space<vmem>>) attributes {dimension_semantics = [#tpu.dimension_semantics<arbitrary>], iteration_bounds = array<i64: 1>, scalar_prefetch = 0 : i64, scratch_operands = 0 : i64, tpu.core_type = #tpu.core_type<tc>, window_params = [{pipeline_mode = #tpu.pipeline_mode<synchronous>, transform_indices = @transform_0, window_bounds = array<i64: 2, 8, 128>}, {pipeline_mode = #tpu.pipeline_mode<synchronous>, transform_indices = @transform_1, window_bounds = array<i64: 2, 8, 128>}]} {
    %c0 = arith.constant 0 : index
    %c0_0 = arith.constant 0 : index
    %c0_1 = arith.constant 0 : index
    %0 = vector.load %arg1[%c0, %c0_0, %c0_1] : memref<2x8x128xf32, #tpu.memory_space<vmem>>, vector<2x8x128xf32>
    %1 = vector.extract_strided_slice %0 {offsets = [0, 2, 0], sizes = [2, 6, 128], strides = [1, 1, 1]} : vector<2x8x128xf32> to vector<2x6x128xf32>
    %2 = vector.extract_strided_slice %0 {offsets = [0, 0, 0], sizes = [2, 2, 128], strides = [1, 1, 1]} : vector<2x8x128xf32> to vector<2x2x128xf32>
    %3 = tpu.concatenate %1, %2 in 1 : vector<2x6x128xf32>, vector<2x2x128xf32> -> vector<2x8x128xf32>
    %4 = vector.extract_strided_slice %3 {offsets = [0, 0, 32], sizes = [2, 8, 96], strides = [1, 1, 1]} : vector<2x8x128xf32> to vector<2x8x96xf32>
    %5 = vector.extract_strided_slice %3 {offsets = [0, 0, 0], sizes = [2, 8, 32], strides = [1, 1, 1]} : vector<2x8x128xf32> to vector<2x8x32xf32>
    %6 = tpu.concatenate %4, %5 in 2 : vector<2x8x96xf32>, vector<2x8x32xf32> -> vector<2x8x128xf32>
    %c0_2 = arith.constant 0 : index
    %c0_3 = arith.constant 0 : index
    %c0_4 = arith.constant 0 : index
    %7 = vector.load %arg2[%c0_2, %c0_3, %c0_4] : memref<2x8x128xf32, #tpu.memory_space<vmem>>, vector<2x8x128xf32>
    tpu.vector_store %arg2[%c0_2, %c0_3, %c0_4], %6 {strides = array<i32>} : memref<2x8x128xf32, #tpu.memory_space<vmem>>, vector<2x8x128xf32>,
    return
  }
  func.func @transform_0(%arg0: i32) -> (i32, i32, i32) {
    %c0_i32 = arith.constant 0 : i32
    %c0_i32_0 = arith.constant 0 : i32
    %c0_i32_1 = arith.constant 0 : i32
    %c0_i32_2 = arith.constant 0 : i32
    return %c0_i32, %c0_i32_0, %c0_i32_1 : i32, i32, i32
  }
  func.func @transform_1(%arg0: i32) -> (i32, i32, i32) {
    %c0_i32 = arith.constant 0 : i32
    %c0_i32_0 = arith.constant 0 : i32
    %c0_i32_1 = arith.constant 0 : i32
    %c0_i32_2 = arith.constant 0 : i32
    return %c0_i32, %c0_i32_0, %c0_i32_1 : i32, i32, i32
  }
}

</mosaic_0001>

<bundles_post_ra>
// kernel: cyclic_shift.1
= control target key start
LH: loop header
LB: loop body
LE: loop exit
PB: predicated region body
PF: predicated region fallthrough
CT: control target
= control target key end

     0   :  { %s34_s10 = smov 96   ;;  %s57_s0 = inlined_call_operand.vmem [shape: f32[2,8,128], index: 0, kind: input, shape index: {}]   ;;  %s58_s1 = inlined_call_operand.vmem [shape: f32[2,8,128], index: 1, kind: output, shape index: {}]  }
   0x1   :  { %v8_v0 = vld [vmem:[%s57_s0] sm:$0xff]  ;;  %v9_v1 = vld [vmem:[%s57_s0 + $0x8] sm:$0xff] }
   0x2   :  { %v12_v2 = vrot.slane %v8_v0, 2  ;;  %v13_v3 = vrot.slane %v9_v1, 2 }
   0x4   :  { %21 = vrot.lane.b32.xlu0 %v12_v2, %s34_s10 }
   0x8   :  { %23 = vrot.lane.b32.xlu0 %v13_v3, %s34_s10 }
  0x76   :  { %v22_v4 = vpop.permute.xlu0 %21 }
  0x77   :  { %27 = vst [vmem:[%s58_s1] sm:$0xff] %v22_v4 }
  0x7a   :  { %v24_v5 = vpop.permute.xlu0 %23 }
  0x7b   :  { %28 = vst [vmem:[%s58_s1 + $0x8] sm:$0xff] %v24_v5 }

</bundles_post_ra>
